<compile_context>
chip_gen: v6e
topology: v6e:2x2x1
jax: 0.10.0
libtpu: 0.0.40
codegen_flags: <defaults>
</compile_context>

<pallas_src>
import functools

import jax
import jax.numpy as jnp
from jax.experimental import pallas as pl
from jax.experimental.pallas import tpu as pltpu

_LANE = 128


def _round_up(x, m):
    return (x + m - 1) // m * m


def _actor_kernel(x_ref, w1_ref, b1_ref, w2_ref, b2_ref, w3_ref, b3_ref, o_ref):
    # One batch tile per grid step.  Three MXU matmuls with f32 accumulation,
    # f32 bias/ReLU epilogues on the VPU, tanh on the EUP restricted to the
    # useful output columns.
    x = x_ref[...]
    if x.dtype != jnp.bfloat16:
        x = x.astype(jnp.bfloat16)

    h1 = jnp.dot(x, w1_ref[...], preferred_element_type=jnp.float32) + b1_ref[...]
    h1 = jnp.maximum(h1, 0.0)                                  # ReLU (f32)

    h2 = jnp.dot(h1.astype(jnp.bfloat16), w2_ref[...],
                 preferred_element_type=jnp.float32) + b2_ref[...]
    h2 = jnp.maximum(h2, 0.0)                                  # ReLU (f32)

    n_out = o_ref.shape[-1]                                    # action_size
    o = jnp.dot(h2.astype(jnp.bfloat16), w3_ref[...],
                preferred_element_type=jnp.float32)
    o = o[:, :n_out] + b3_ref[...]                             # drop padded lanes
    o_ref[...] = jnp.tanh(o)                                   # store only action_size cols


def _actor_call(x, w1, b1, w2, b2, w3, b3, action_size, tb):
    """One pallas_call over a batch that is an exact multiple of tb."""
    batch, state_size = x.shape
    d1 = w1.shape[1]
    d2 = w2.shape[1]
    out_pad = w3.shape[1]   # fc3 weight is lane-padded to a multiple of 128

    return pl.pallas_call(
        _actor_kernel,
        out_shape=jax.ShapeDtypeStruct((batch, action_size), jnp.float32),
        grid=(batch // tb,),
        in_specs=[
            pl.BlockSpec((tb, state_size), lambda i: (i, 0)),    # activations: tiled
            pl.BlockSpec((state_size, d1), lambda i: (0, 0)),    # weights/biases:
            pl.BlockSpec((1, d1), lambda i: (0, 0)),             #   constant block ->
            pl.BlockSpec((d1, d2), lambda i: (0, 0)),            #   fetched once,
            pl.BlockSpec((1, d2), lambda i: (0, 0)),             #   VMEM-resident
            pl.BlockSpec((d2, out_pad), lambda i: (0, 0)),
            pl.BlockSpec((1, action_size), lambda i: (0, 0)),    # fc3 bias, unpadded
        ],
        out_specs=pl.BlockSpec((tb, action_size), lambda i: (i, 0)),
        compiler_params=pltpu.CompilerParams(
            dimension_semantics=("parallel",),      # shard batch tiles over v7x's 2 TCs
            vmem_limit_bytes=28 * 1024 * 1024,      # > v5e's 16 MiB default, safe on all gens
        ),
    )(x, w1, b1, w2, b2, w3, b3)


@functools.partial(jax.jit, static_argnames=("action_size", "block_b"))
def actor_forward(x, w1, b1, w2, b2, w3, b3, *, action_size, block_b=2048):
    """x: (batch, state_size) f32 or bf16.  Weights (in, out) bf16; w3 is
    lane-padded to a multiple of 128 output columns, b3 is unpadded f32.
    Returns (batch, action_size) f32."""
    batch = x.shape[0]

    # Tile choice: multiple of 8 sublanes; >=2 tiles when batch > 256 so both
    # v7x TensorCores get work; capped at 2048 rows for VMEM headroom.
    if batch > 256:
        target = _round_up(-(-batch // 2), 8)
    else:
        target = _round_up(batch, 8)
    tb = _round_up(max(8, min(block_b, target, 2048)), 8)

    # TODO(synk): for latency-critical batch=1 inference a persistent
    # weight-resident path (or plain fused XLA) would beat re-DMAing weights
    # each call; kept on the kernel path here for a single code path.

    parts = []
    n_full = batch // tb
    if n_full > 0:
        parts.append(
            _actor_call(x[: n_full * tb], w1, b1, w2, b2, w3, b3, action_size, tb))
    rem = batch - n_full * tb
    if rem > 0:
        rem_tb = _round_up(rem, 8)
        xr = x[n_full * tb:]
        if rem_tb != rem:
            # Only the tiny remainder slice gets padded (no full-array copy).
            xr = jnp.pad(xr, ((0, rem_tb - rem), (0, 0)))
        parts.append(
            _actor_call(xr, w1, b1, w2, b2, w3, b3, action_size, rem_tb)[:rem])

    if len(parts) == 1:
        return parts[0]
    return jnp.concatenate(parts, axis=0)


def init_actor_params(key, state_size, action_size, h_dim1=512, h_dim2=256):
    """f32 master params mirroring the PyTorch module's reset_parameters().

    hidden_init() uses weight.size()[0] == out_features, so lim = 1/sqrt(out)
    for fc1/fc2 weights; fc3 weight is U(-3e-3, 3e-3).  Biases keep PyTorch's
    default Linear init: U(-1/sqrt(in), 1/sqrt(in)).  Weights are returned
    already transposed to (in, out) so each layer is x @ W + b.
    """
    ks = jax.random.split(key, 6)

    def u(k, shape, lim):
        return jax.random.uniform(k, shape, jnp.float32, -lim, lim)

    lim1 = 1.0 / jnp.sqrt(jnp.float32(h_dim1))
    lim2 = 1.0 / jnp.sqrt(jnp.float32(h_dim2))
    w1 = u(ks[0], (state_size, h_dim1), lim1)
    b1 = u(ks[1], (1, h_dim1), 1.0 / jnp.sqrt(jnp.float32(state_size)))
    w2 = u(ks[2], (h_dim1, h_dim2), lim2)
    b2 = u(ks[3], (1, h_dim2), 1.0 / jnp.sqrt(jnp.float32(h_dim1)))
    w3 = u(ks[4], (h_dim2, action_size), 0.003)
    b3 = u(ks[5], (1, action_size), 1.0 / jnp.sqrt(jnp.float32(h_dim2)))
    return w1, b1, w2, b2, w3, b3


def prepare_params(params, action_size):
    """One-time setup: cast weights to bf16 (halves weight DMA, native MXU
    rate) and zero-pad only the fc3 *weight* to 128 output lanes for the MXU.
    Biases stay f32 (f32 epilogue); b3 stays unpadded."""
    w1, b1, w2, b2, w3, b3 = params
    out_pad = _round_up(action_size, _LANE)
    w3p = jnp.pad(w3, ((0, 0), (0, out_pad - action_size)))
    return (w1.astype(jnp.bfloat16), b1,
            w2.astype(jnp.bfloat16), b2,
            w3p.astype(jnp.bfloat16), b3)


if __name__ == "__main__":
    state_size = 32
    action_size = 8

    key = jax.random.PRNGKey(0)
    pkey, xkey1, xkey2 = jax.random.split(key, 3)
    params_f32 = init_actor_params(pkey, state_size, action_size)
    kparams = prepare_params(params_f32, action_size)

    def ref_fwd(x):
        w1, b1, w2, b2, w3, b3 = params_f32
        h1 = jnp.maximum(x @ w1 + b1, 0.0)
        h2 = jnp.maximum(h1 @ w2 + b2, 0.0)
        return jnp.tanh(h2 @ w3 + b3)

    # (1) Single-state path: the PyTorch forward does .unsqueeze(0) -> batch 1.
    state = jax.random.normal(xkey1, (state_size,), jnp.float32)
    x1 = state[None, :]
    out1 = jax.block_until_ready(
        actor_forward(x1, *kparams, action_size=action_size))
    assert out1.shape == (1, action_size)
    assert jnp.allclose(out1, ref_fwd(x1), atol=2e-2, rtol=2e-2)

    # (2) Batched ragged path: main grid (2 tiles of 128) + remainder call (44->48).
    xb = jax.random.normal(xkey2, (300, state_size), jnp.float32)
    outb = jax.block_until_ready(
        actor_forward(xb, *kparams, action_size=action_size, block_b=128))
    assert outb.shape == (300, action_size)
    assert jnp.allclose(outb, ref_fwd(xb), atol=2e-2, rtol=2e-2)

    # (3) Default tile path (single call, >=2 tiles when batch > 256).
    outc = jax.block_until_ready(
        actor_forward(xb, *kparams, action_size=action_size))
    assert outc.shape == (300, action_size)
    assert jnp.allclose(outc, ref_fwd(xb), atol=2e-2, rtol=2e-2)

    print("KERNEL_OK")
</pallas_src>

<mosaic_0001>
module attributes {stable_mosaic.version = 11 : i64} {
  func.func @_actor_kernel(%arg0: i32, %arg1: memref<8x32xf32, #tpu.memory_space<vmem>>, %arg2: memref<32x512xbf16, #tpu.memory_space<vmem>>, %arg3: memref<1x512xf32, #tpu.memory_space<vmem>>, %arg4: memref<512x256xbf16, #tpu.memory_space<vmem>>, %arg5: memref<1x256xf32, #tpu.memory_space<vmem>>, %arg6: memref<256x128xbf16, #tpu.memory_space<vmem>>, %arg7: memref<1x8xf32, #tpu.memory_space<vmem>>, %arg8: memref<8x8xf32, #tpu.memory_space<vmem>>) attributes {dimension_semantics = [#tpu.dimension_semantics<parallel>], iteration_bounds = array<i64: 1>, scalar_prefetch = 0 : i64, scratch_operands = 0 : i64, tpu.core_type = #tpu.core_type<tc>, window_params = [{transform_indices = @transform_0, window_bounds = array<i64: 8, 32>}, {pipeline_mode = #tpu.pipeline_mode<synchronous>, transform_indices = @transform_1, window_bounds = array<i64: 32, 512>}, {pipeline_mode = #tpu.pipeline_mode<synchronous>, transform_indices = @transform_2, window_bounds = array<i64: 1, 512>}, {pipeline_mode = #tpu.pipeline_mode<synchronous>, transform_indices = @transform_3, window_bounds = array<i64: 512, 256>}, {pipeline_mode = #tpu.pipeline_mode<synchronous>, transform_indices = @transform_4, window_bounds = array<i64: 1, 256>}, {pipeline_mode = #tpu.pipeline_mode<synchronous>, transform_indices = @transform_5, window_bounds = array<i64: 256, 128>}, {pipeline_mode = #tpu.pipeline_mode<synchronous>, transform_indices = @transform_6, window_bounds = array<i64: 1, 8>}, {transform_indices = @transform_7, window_bounds = array<i64: 8, 8>}]} {
    %c0 = arith.constant 0 : index
    %c0_0 = arith.constant 0 : index
    %0 = vector.load %arg1[%c0, %c0_0] : memref<8x32xf32, #tpu.memory_space<vmem>>, vector<8x32xf32>
    %1 = arith.truncf %0 : vector<8x32xf32> to vector<8x32xbf16>
    %c0_1 = arith.constant 0 : index
    %c0_2 = arith.constant 0 : index
    %2 = vector.load %arg2[%c0_1, %c0_2] : memref<32x512xbf16, #tpu.memory_space<vmem>>, vector<32x512xbf16>
    %cst = arith.constant dense<0.000000e+00> : vector<8x512xf32>
    %3 = tpu.matmul %1, %2, %cst {dimension_numbers = #tpu.dot_dimension_numbers<[1], [0], [0], [1], [0, 0, 1, 1], [], []>} : vector<8x32xbf16>, vector<32x512xbf16>, vector<8x512xf32> -> vector<8x512xf32>
    %c0_3 = arith.constant 0 : index
    %c0_4 = arith.constant 0 : index
    %4 = vector.load %arg3[%c0_3, %c0_4] : memref<1x512xf32, #tpu.memory_space<vmem>>, vector<1x512xf32>
    %5 = vector.broadcast %4 : vector<1x512xf32> to vector<8x512xf32>
    %6 = arith.addf %3, %5 : vector<8x512xf32>
    %cst_5 = arith.constant 0.000000e+00 : f32
    %7 = vector.broadcast %cst_5 : f32 to vector<8x512xf32>
    %8 = arith.maximumf %6, %7 : vector<8x512xf32>
    %9 = arith.truncf %8 : vector<8x512xf32> to vector<8x512xbf16>
    %c0_6 = arith.constant 0 : index
    %c0_7 = arith.constant 0 : index
    %10 = vector.load %arg4[%c0_6, %c0_7] : memref<512x256xbf16, #tpu.memory_space<vmem>>, vector<512x256xbf16>
    %cst_8 = arith.constant dense<0.000000e+00> : vector<8x256xf32>
    %11 = tpu.matmul %9, %10, %cst_8 {dimension_numbers = #tpu.dot_dimension_numbers<[1], [0], [0], [1], [0, 0, 1, 1], [], []>} : vector<8x512xbf16>, vector<512x256xbf16>, vector<8x256xf32> -> vector<8x256xf32>
    %c0_9 = arith.constant 0 : index
    %c0_10 = arith.constant 0 : index
    %12 = vector.load %arg5[%c0_9, %c0_10] : memref<1x256xf32, #tpu.memory_space<vmem>>, vector<1x256xf32>
    %13 = vector.broadcast %12 : vector<1x256xf32> to vector<8x256xf32>
    %14 = arith.addf %11, %13 : vector<8x256xf32>
    %cst_11 = arith.constant 0.000000e+00 : f32
    %15 = vector.broadcast %cst_11 : f32 to vector<8x256xf32>
    %16 = arith.maximumf %14, %15 : vector<8x256xf32>
    %17 = arith.truncf %16 : vector<8x256xf32> to vector<8x256xbf16>
    %c0_12 = arith.constant 0 : index
    %c0_13 = arith.constant 0 : index
    %18 = vector.load %arg6[%c0_12, %c0_13] : memref<256x128xbf16, #tpu.memory_space<vmem>>, vector<256x128xbf16>
    %cst_14 = arith.constant dense<0.000000e+00> : vector<8x128xf32>
    %19 = tpu.matmul %17, %18, %cst_14 {dimension_numbers = #tpu.dot_dimension_numbers<[1], [0], [0], [1], [0, 0, 1, 1], [], []>} : vector<8x256xbf16>, vector<256x128xbf16>, vector<8x128xf32> -> vector<8x128xf32>
    %20 = vector.extract_strided_slice %19 {offsets = [0, 0], sizes = [8, 8], strides = [1, 1]} : vector<8x128xf32> to vector<8x8xf32>
    %c0_15 = arith.constant 0 : index
    %c0_16 = arith.constant 0 : index
    %21 = vector.load %arg7[%c0_15, %c0_16] : memref<1x8xf32, #tpu.memory_space<vmem>>, vector<1x8xf32>
    %22 = vector.broadcast %21 : vector<1x8xf32> to vector<8x8xf32>
    %23 = arith.addf %20, %22 : vector<8x8xf32>
    %24 = math.tanh %23 : vector<8x8xf32>
    %c0_17 = arith.constant 0 : index
    %c0_18 = arith.constant 0 : index
    %25 = vector.load %arg8[%c0_17, %c0_18] : memref<8x8xf32, #tpu.memory_space<vmem>>, vector<8x8xf32>
    tpu.vector_store %arg8[%c0_17, %c0_18], %24 {strides = array<i32>} : memref<8x8xf32, #tpu.memory_space<vmem>>, vector<8x8xf32>,
    return
  }
  func.func @transform_0(%arg0: i32) -> (i32, i32) {
    %c0_i32 = arith.constant 0 : i32
    %c0_i32_0 = arith.constant 0 : i32
    return %arg0, %c0_i32 : i32, i32
  }
  func.func @transform_1(%arg0: i32) -> (i32, i32) {
    %c0_i32 = arith.constant 0 : i32
    %c0_i32_0 = arith.constant 0 : i32
    %c0_i32_1 = arith.constant 0 : i32
    return %c0_i32, %c0_i32_0 : i32, i32
  }
  func.func @transform_2(%arg0: i32) -> (i32, i32) {
    %c0_i32 = arith.constant 0 : i32
    %c0_i32_0 = arith.constant 0 : i32
    %c0_i32_1 = arith.constant 0 : i32
    return %c0_i32, %c0_i32_0 : i32, i32
  }
  func.func @transform_3(%arg0: i32) -> (i32, i32) {
    %c0_i32 = arith.constant 0 : i32
    %c0_i32_0 = arith.constant 0 : i32
    %c0_i32_1 = arith.constant 0 : i32
    return %c0_i32, %c0_i32_0 : i32, i32
  }
  func.func @transform_4(%arg0: i32) -> (i32, i32) {
    %c0_i32 = arith.constant 0 : i32
    %c0_i32_0 = arith.constant 0 : i32
    %c0_i32_1 = arith.constant 0 : i32
    return %c0_i32, %c0_i32_0 : i32, i32
  }
  func.func @transform_5(%arg0: i32) -> (i32, i32) {
    %c0_i32 = arith.constant 0 : i32
    %c0_i32_0 = arith.constant 0 : i32
    %c0_i32_1 = arith.constant 0 : i32
    return %c0_i32, %c0_i32_0 : i32, i32
  }
  func.func @transform_6(%arg0: i32) -> (i32, i32) {
    %c0_i32 = arith.constant 0 : i32
    %c0_i32_0 = arith.constant 0 : i32
    %c0_i32_1 = arith.constant 0 : i32
    return %c0_i32, %c0_i32_0 : i32, i32
  }
  func.func @transform_7(%arg0: i32) -> (i32, i32) {
    %c0_i32 = arith.constant 0 : i32
    %c0_i32_0 = arith.constant 0 : i32
    return %arg0, %c0_i32 : i32, i32
  }
}

</mosaic_0001>

<bundles_post_ra>
// kernel: actor_forward.1
= control target key start
LH: loop header
LB: loop body
LE: loop exit
PB: predicated region body
PF: predicated region fallthrough
CT: control target
= control target key end

     0   :  { %12 = vsyncpa [#allocation3], 0  ;;  %s1304_s0 = inlined_call_operand.vmem [shape: f32[8,32], index: 0, kind: input, shape index: {}]   ;;  %s1305_s1 = inlined_call_operand.hbm [shape: bf16[32,512], index: 1, kind: input, shape index: {}]   ;;  %s1306_s2 = inlined_call_operand.vmem [shape: f32[1,512], index: 2, kind: input, shape index: {}]   ;;  %s1307_s3 = inlined_call_operand.hbm [shape: bf16[512,256], index: 3, kind: input, shape index: {}]   ;;  %s1308_s4 = inlined_call_operand.vmem [shape: f32[1,256], index: 4, kind: input, shape index: {}]   ;;  %s1309_s5 = inlined_call_operand.hbm [shape: bf16[256,128], index: 5, kind: input, shape index: {}]   ;;  %s1310_s6 = inlined_call_operand.vmem [shape: f32[1,8], index: 6, kind: input, shape index: {}]   ;;  %s1311_s7 = inlined_call_operand.vmem [shape: f32[8,8], index: 7, kind: output, shape index: {}]  }
   0x1   :  { %13 = vsyncpa [#allocation5], 0  ;;  %s1214_s24 = smov [#allocation4]  }
   0x2   :  { %s35_s25 = sshll.u32 %s1214_s24, 4  ;;  %s36_s25 = int_to_ptr.vmem [resolvable:$true] %s35_s25 }
   0x3   :  { %s1158_s26 = scalar_lea.vmem %s36_s25, 8192  ;;  %p1163_p1 = scmp.lt.s32.totalorder %s36_s25, %s36_s25 }
   0x4   :  { %p1159_p0 = scmp.ne.s32.totalorder %s36_s25, %s1158_s26  ;;  %p1164_p2 = scmp.lt.s32.totalorder %s1158_s26, %s1158_s26 }
   0x6   :  { %p1165_p3 = por %p1164_p2, %p1163_p1 }
   0x8   :  { %p1166_p4 = pnand %p1165_p3, %p1159_p0 }
   0xa   :  { %1169 = shalt.err (!%p1166_p4)
}
   0xb   :  { %s1215_s27 = smov 128   ;;  %s1216_s28 = smov 8  }
   0xc   :  { %41 = dma.hbm_to_vmem [thread:$0]  %s1307_s3, 8192, %s36_s25, [#allocation5], %s1215_s27, %s1215_s27, %s1216_s28  }
   0xd   :  { %s1217_s8 = smov [#allocation2]  }
   0xe   :  { %s21_s9 = sshll.u32 %s1217_s8, 4  ;;  %s22_s9 = int_to_ptr.vmem [resolvable:$true] %s21_s9 }
   0xf   :  { %s1178_s10 = scalar_lea.vmem %s22_s9, 1024  ;;  %p1183_p6 = scmp.lt.s32.totalorder %s22_s9, %s22_s9 }
  0x10   :  { %p1179_p5 = scmp.ne.s32.totalorder %s22_s9, %s1178_s10  ;;  %p1184_p7 = scmp.lt.s32.totalorder %s1178_s10, %s1178_s10 }
  0x12   :  { %p1185_p8 = por %p1184_p7, %p1183_p6 }
  0x14   :  { %p1186_p9 = pnand %p1185_p8, %p1179_p5 }
  0x16   :  { %1189 = shalt.err (!%p1186_p9)
}
  0x17   :  { %s1218_s11 = smov 256   ;;  %s1219_s12 = smov 16  }
  0x18   :  { %27 = dma.hbm_to_vmem [thread:$0]  %s1305_s1, 1024, %s22_s9, [#allocation3], %s1218_s11, %s1218_s11, %s1219_s12  }
  0x19   :  { %s1220_s15 = smov [#allocation6]  }
  0x1a   :  { %s49_s16 = sshll.u32 %s1220_s15, 4  ;;  %s50_s16 = int_to_ptr.vmem [resolvable:$true] %s49_s16 }
  0x1b   :  { %s1198_s3 = scalar_lea.vmem %s50_s16, 2048  ;;  %p1203_p11 = scmp.lt.s32.totalorder %s50_s16, %s50_s16 }
  0x1c   :  { %p1199_p10 = scmp.ne.s32.totalorder %s50_s16, %s1198_s3  ;;  %p1204_p12 = scmp.lt.s32.totalorder %s1198_s3, %s1198_s3 }
  0x1e   :  { %p1205_p13 = por %p1204_p12, %p1203_p11 }
  0x20   :  { %p1206_p0 = pnand %p1205_p13, %p1199_p10 }
  0x22   :  { %1209 = shalt.err (!%p1206_p0)
}
  0x23   :  { %s1221_s17 = smov 64   ;;  %s1222_s18 = smov 4  }
  0x24   :  { %55 = dma.hbm_to_vmem [thread:$0]  %s1309_s5, 2048, %s50_s16, [#allocation5], %s1221_s17, %s1221_s17, %s1222_s18  }
  0x25   :  { %1210 = dma.done.wait [#allocation3], 1024  }
  0x26   :  { %1211 = vsyncadd [#allocation3], 4294966272 }
  0x27   :  { %1212 = dma.done.wait [#allocation5], 10240  }
  0x28   :  { %1213 = vsyncadd [#allocation5], 4294957056  ;;  %v1223_v0 = vmov 0   ;;  %v1024_v1 = vld [vmem:[#allocation2 + $0x24] ss:$16 sps:$4 sm:$0xff]   ;;  %vm140_vm0 = vcmask 261120  }
  0x29   :  { %176 = vmatprep.mubr.bf16.mxu1 %v1223_v0  ;;  %v1026_v2 = vld [vmem:[#allocation2 + $0x20] ss:$16 sps:$4 sm:$0xff]   ;;  %156 = vmatprep.subr.bf16.mxu1 %v1024_v1  ;;  %v1027_v3 = vld [vmem:[#allocation2 + $0x4] ss:$16 sps:$4 sm:$0xff]   ;;  %v1032_v6 = vld [vmem:[#allocation2 + $0x2c] ss:$16 sps:$4 sm:$0xff]  }
  0x2a   :  { %v1029_v4 = vld [vmem:[#allocation2] ss:$16 sps:$4 sm:$0xff]   ;;  %157 = vmatpush1.bf16.msra.mxu1 %v1026_v2  ;;  %v1030_v7 = vld [vmem:[#allocation2 + $0x28] ss:$16 sps:$4 sm:$0xff]   ;;  %v1036_v9 = vld [vmem:[#allocation4 + $0x74] ss:$8 sps:$4 sm:$0xff]  }
  0x2b   :  { %v68_v5 = vld [vmem:[%s1304_s0] sm:$0xff]  ;;  %158 = vmatprep.subr.bf16.mxu1 %v1027_v3  ;;  %v1038_v10 = vld [vmem:[#allocation4 + $0x70] ss:$8 sps:$4 sm:$0xff]   ;;  %v1035_v12 = vld [vmem:[#allocation2 + $0xc] ss:$16 sps:$4 sm:$0xff]   ;;  %630 = vmatprep.subr.bf16.mxu0 %v1036_v9  ;;  %vm893_vm1 = vcmask 64512  }
  0x2c   :  { %v69_v8 = vpack.c.bf16 %v68_v5, %v68_v5  ;;  %v1039_v11 = vld [vmem:[#allocation4 + $0x64] ss:$8 sps:$4 sm:$0xff]   ;;  %631 = vmatpush1.bf16.msra.mxu0 %v1038_v10  ;;  %v1041_v13 = vld [vmem:[#allocation4 + $0x60] ss:$8 sps:$4 sm:$0xff]   ;;  %v1042_v14 = vld [vmem:[#allocation4 + $0x54] ss:$8 sps:$4 sm:$0xff]  }
  0x2d   :  { %632 = vmatprep.subr.bf16.mxu0 %v1039_v11  ;;  %v1033_v15 = vld [vmem:[#allocation2 + $0x8] ss:$16 sps:$4 sm:$0xff]   ;;  %v1046_v16 = vld [vmem:[#allocation4 + $0x174] ss:$8 sps:$4 sm:$0xff]   ;;  %v1048_v18 = vld [vmem:[#allocation4 + $0x44] ss:$8 sps:$4 sm:$0xff]  }
  0x2e   :  { %159 = vmatpush1.bf16.msra.mxu1 %v1029_v4  ;;  %v1047_v17 = vld [vmem:[#allocation4 + $0x50] ss:$8 sps:$4 sm:$0xff]   ;;  %v1052_v20 = vld [vmem:[#allocation4 + $0x164] ss:$8 sps:$4 sm:$0xff]   ;;  %v1053_v21 = vld [vmem:[#allocation4 + $0x40] ss:$8 sps:$4 sm:$0xff]  }
  0x2f   :  { %197 = vmatprep.subr.bf16.mxu1 %v1032_v6  ;;  %v1044_v19 = vld [vmem:[#allocation4 + $0x170] ss:$8 sps:$4 sm:$0xff]   ;;  %v1054_v22 = vld [vmem:[#allocation4 + $0x34] ss:$8 sps:$4 sm:$0xff]   ;;  %v1050_v23 = vld [vmem:[#allocation4 + $0x160] ss:$8 sps:$4 sm:$0xff]  }
  0x30   :  { %633 = vmatpush1.bf16.msra.mxu0 %v1041_v13  ;;  %v1058_v24 = vld [vmem:[#allocation4 + $0x154] ss:$8 sps:$4 sm:$0xff]   ;;  %v1059_v25 = vld [vmem:[#allocation4 + $0x30] ss:$8 sps:$4 sm:$0xff]   ;;  %v1060_v26 = vld [vmem:[#allocation4 + $0x24] ss:$8 sps:$4 sm:$0xff]  }
  0x31   :  { %909 = vmatmul.mubr.msk.bf16.vlgmr.msra.gmra.mxu1 %vm140_vm0, %v69_v8  ;;  %634 = vmatprep.subr.bf16.mxu0 %v1042_v14  ;;  %v1056_v27 = vld [vmem:[#allocation4 + $0x150] ss:$8 sps:$4 sm:$0xff]   ;;  %v1064_v28 = vld [vmem:[#allocation4 + $0x144] ss:$8 sps:$4 sm:$0xff]   ;;  %v1065_v29 = vld [vmem:[#allocation4 + $0x20] ss:$8 sps:$4 sm:$0xff]  }
  0x32   :  { %198 = vmatpush1.bf16.msra.mxu1 %v1030_v7  ;;  %217 = vmatprep.mubr.bf16.mxu1 %v1223_v0  ;;  %v1066_v30 = vld [vmem:[#allocation4 + $0x14] ss:$8 sps:$4 sm:$0xff]   ;;  %v1062_v31 = vld [vmem:[#allocation4 + $0x140] ss:$8 sps:$4 sm:$0xff]   ;;  %v1071_v33 = vld [vmem:[#allocation4 + $0x10] ss:$8 sps:$4 sm:$0xff]  }
  0x33   :  { %199 = vmatprep.subr.bf16.mxu1 %v1035_v12  ;;  %v1070_v32 = vld [vmem:[#allocation4 + $0x134] ss:$8 sps:$4 sm:$0xff]   ;;  %v1072_v34 = vld [vmem:[#allocation4 + $0x4] ss:$8 sps:$4 sm:$0xff]   ;;  %v1068_v35 = vld [vmem:[#allocation4 + $0x130] ss:$8 sps:$4 sm:$0xff]   ;;  %v80_v12 = vlaneseq }
  0x34   :  { %635 = vmatpush1.bf16.msra.mxu0 %v1047_v17  ;;  %v1076_v36 = vld [vmem:[#allocation4 + $0x124] ss:$8 sps:$4 sm:$0xff]   ;;  %v1077_v37 = vld [vmem:[#allocation4] ss:$8 sps:$4 sm:$0xff]   ;;  %v1078_v38 = vld [vmem:[#allocation4 + $0xf4] ss:$8 sps:$4 sm:$0xff]  }
  0x35   :  { %636 = vmatprep.subr.bf16.mxu0 %v1048_v18  ;;  %v1074_v39 = vld [vmem:[#allocation4 + $0x120] ss:$8 sps:$4 sm:$0xff]   ;;  %v1082_v40 = vld [vmem:[#allocation4 + $0x114] ss:$8 sps:$4 sm:$0xff]   ;;  %v1083_v41 = vld [vmem:[#allocation4 + $0xf0] ss:$8 sps:$4 sm:$0xff]  }
  0x36   :  { %200 = vmatpush1.bf16.msra.mxu1 %v1033_v15  ;;  %v1084_v42 = vld [vmem:[#allocation4 + $0xe4] ss:$8 sps:$4 sm:$0xff]   ;;  %v1080_v43 = vld [vmem:[#allocation4 + $0x110] ss:$8 sps:$4 sm:$0xff]   ;;  %v1089_v45 = vld [vmem:[#allocation4 + $0xe0] ss:$8 sps:$4 sm:$0xff]  }
  0x37   :  { %671 = vmatprep.subr.bf16.mxu1 %v1046_v16  ;;  %v1088_v44 = vld [vmem:[#allocation4 + $0x104] ss:$8 sps:$4 sm:$0xff]   ;;  %v1090_v46 = vld [vmem:[#allocation4 + $0xd4] ss:$8 sps:$4 sm:$0xff]   ;;  %v1086_v47 = vld [vmem:[#allocation4 + $0x100] ss:$8 sps:$4 sm:$0xff]  }
  0x38   :  { %637 = vmatpush1.bf16.msra.mxu0 %v1053_v21  ;;  %v1094_v48 = vld [vmem:[#allocation4 + $0x1f4] ss:$8 sps:$4 sm:$0xff]   ;;  %v1095_v49 = vld [vmem:[#allocation4 + $0xd0] ss:$8 sps:$4 sm:$0xff]   ;;  %v1096_v50 = vld [vmem:[#allocation4 + $0xc4] ss:$8 sps:$4 sm:$0xff]  }
  0x39   :  { %910 = vmatmul.mubr.msk.bf16.vlgmr.msra.gmra.mxu1 %vm140_vm0, %v69_v8  ;;  %638 = vmatprep.subr.bf16.mxu0 %v1054_v22  ;;  %v1092_v51 = vld [vmem:[#allocation4 + $0x1f0] ss:$8 sps:$4 sm:$0xff]   ;;  %v1100_v52 = vld [vmem:[#allocation4 + $0x1e4] ss:$8 sps:$4 sm:$0xff]   ;;  %v1101_v53 = vld [vmem:[#allocation4 + $0xc0] ss:$8 sps:$4 sm:$0xff]  }
  0x3a   :  { %672 = vmatpush1.bf16.msra.mxu1 %v1044_v19  ;;  %v1102_v54 = vld [vmem:[#allocation4 + $0xb4] ss:$8 sps:$4 sm:$0xff]   ;;  %v1098_v55 = vld [vmem:[#allocation4 + $0x1e0] ss:$8 sps:$4 sm:$0xff]   ;;  %v1107_v57 = vld [vmem:[#allocation4 + $0xb0] ss:$8 sps:$4 sm:$0xff]  }
  0x3b   :  { %673 = vmatprep.subr.bf16.mxu1 %v1052_v20  ;;  %v1106_v56 = vld [vmem:[#allocation4 + $0x1d4] ss:$8 sps:$4 sm:$0xff]   ;;  %v1108_v58 = vld [vmem:[#allocation4 + $0xa4] ss:$8 sps:$4 sm:$0xff]   ;;  %v1104_v59 = vld [vmem:[#allocation4 + $0x1d0] ss:$8 sps:$4 sm:$0xff]  }
  0x3c   :  { %639 = vmatpush1.bf16.msra.mxu0 %v1059_v25  ;;  %v1112_v60 = vld [vmem:[#allocation4 + $0x1c4] ss:$8 sps:$4 sm:$0xff]   ;;  %v1113_v61 = vld [vmem:[#allocation4 + $0xa0] ss:$8 sps:$4 sm:$0xff]   ;;  %v1114_v63 = vld [vmem:[#allocation4 + $0x94] ss:$8 sps:$4 sm:$0xff]  }
  0x3d   :  { %640 = vmatprep.subr.bf16.mxu0 %v1060_v26  ;;  %v1110_v62 = vld [vmem:[#allocation4 + $0x1c0] ss:$8 sps:$4 sm:$0xff]   ;;  %v1118_v0 = vld [vmem:[#allocation4 + $0x1b4] ss:$8 sps:$4 sm:$0xff]   ;;  %v1116_v1 = vld [vmem:[#allocation4 + $0x1b0] ss:$8 sps:$4 sm:$0xff]  }
  0x3e   :  { %674 = vmatpush1.bf16.msra.mxu1 %v1050_v23  ;;  %v1119_v2 = vld [vmem:[#allocation4 + $0x90] ss:$8 sps:$4 sm:$0xff]   ;;  %v1120_v3 = vld [vmem:[#allocation4 + $0x84] ss:$8 sps:$4 sm:$0xff]   ;;  %v1122_v5 = vld [vmem:[#allocation4 + $0x1a0] ss:$8 sps:$4 sm:$0xff]  }
  0x3f   :  { %675 = vmatprep.subr.bf16.mxu1 %v1058_v24  ;;  %v1124_v4 = vld [vmem:[#allocation4 + $0x1a4] ss:$8 sps:$4 sm:$0xff]   ;;  %v1125_v6 = vld [vmem:[#allocation4 + $0x80] ss:$8 sps:$4 sm:$0xff]   ;;  %v1128_v7 = vld [vmem:[#allocation4 + $0x194] ss:$8 sps:$4 sm:$0xff]  }
  0x40   :  { %641 = vmatpush1.bf16.msra.mxu0 %v1065_v29  ;;  %v1126_v8 = vld [vmem:[#allocation4 + $0x190] ss:$8 sps:$4 sm:$0xff]   ;;  %v1131_v9 = vld [vmem:[#allocation4 + $0x184] ss:$8 sps:$4 sm:$0xff]   ;;  %v1129_v10 = vld [vmem:[#allocation4 + $0x180] ss:$8 sps:$4 sm:$0xff]  }
  0x41   :  { %642 = vmatprep.subr.bf16.mxu0 %v1066_v30  ;;  %v1132_v11 = vld [vmem:[#allocation6 + $0x78] sm:$0xff]   ;;  %v1278_v13 = vshrl.u32 %v80_v12, 7  ;;  %v78_v15 = vld [vmem:[%s1306_s2] sm:$0xf] }
  0x42   :  { %676 = vmatpush1.bf16.msra.mxu1 %v1056_v27 }
  0x43   :  { %677 = vmatprep.subr.bf16.mxu1 %v1064_v28  ;;  %v82_v14 = vsub.s32 0, %v1278_v13  ;;  %v86_v16 = vsub.s32 1, %v1278_v13  ;;  %v90_v21 = vsub.s32 2, %v1278_v13  ;;  %v94_v24 = vsub.s32 3, %v1278_v13  ;;  %v991_v13 = vld [vmem:[%s1310_s6] ss:$0 sm:$0xff] }
  0x44   :  { %643 = vmatpush1.bf16.msra.mxu0 %v1071_v33 }
  0x45   :  { %644 = vmatprep.subr.bf16.mxu0 %v1072_v34  ;;  %v83_v17 = vrot.slane %v78_v15, %v82_v14  ;;  %v87_v18 = vrot.slane %v78_v15, %v86_v16  ;;  %v91_v27 = vrot.slane %v78_v15, %v90_v21 }
  0x46   :  { %678 = vmatpush1.bf16.msra.mxu1 %v1062_v31  ;;  %v95_v31 = vrot.slane %v78_v15, %v94_v24 }
  0x47   :  { %679 = vmatprep.subr.bf16.mxu1 %v1070_v32  ;;  %v1133_v32 = vld [vmem:[#allocation6 + $0x38] sm:$0xff]  }
  0x48   :  { %645 = vmatpush1.bf16.msra.mxu0 %v1077_v37 }
  0x49   :  { %646 = vmatprep.subr.bf16.mxu0 %v1078_v38 }
  0x4a   :  { %680 = vmatpush1.bf16.msra.mxu1 %v1068_v35  ;;  %v1134_v35 = vld [vmem:[#allocation6 + $0x70] sm:$0xff]  }
  0x4b   :  { %681 = vmatprep.subr.bf16.mxu1 %v1076_v36 }
  0x4c   :  { %647 = vmatpush2.bf16.msra.mxu0 %v1083_v41 }
  0x4d   :  { %648 = vmatprep.subr.bf16.mxu0 %v1084_v42  ;;  %v1136_v42 = vld [vmem:[#allocation6 + $0x68] sm:$0xff]  }
  0x4e   :  { %682 = vmatpush1.bf16.msra.mxu1 %v1074_v39  ;;  %v1135_v39 = vld [vmem:[#allocation6 + $0x30] sm:$0xff]  }
  0x4f   :  { %683 = vmatprep.subr.bf16.mxu1 %v1082_v40 }
  0x50   :  { %649 = vmatpush2.bf16.msra.mxu0 %v1089_v45 }
  0x51   :  { %650 = vmatprep.subr.bf16.mxu0 %v1090_v46  ;;  %v1137_v46 = vld [vmem:[#allocation6 + $0x28] sm:$0xff]  }
  0x52   :  { %684 = vmatpush1.bf16.msra.mxu1 %v1080_v43 }
  0x53   :  { %685 = vmatprep.subr.bf16.mxu1 %v1088_v44 }
  0x54   :  { %651 = vmatpush2.bf16.msra.mxu0 %v1095_v49  ;;  %v1139_v49 = vld [vmem:[#allocation6 + $0x20] sm:$0xff]  }
  0x55   :  { %652 = vmatprep.subr.bf16.mxu0 %v1096_v50  ;;  %v1140_v50 = vld [vmem:[#allocation6 + $0x58] sm:$0xff]  }
  0x56   :  { %686 = vmatpush1.bf16.msra.mxu1 %v1086_v47 }
  0x57   :  { %687 = vmatprep.subr.bf16.mxu1 %v1094_v48  ;;  %v1138_v48 = vld [vmem:[#allocation6 + $0x60] sm:$0xff]  }
  0x58   :  { %653 = vmatpush2.bf16.msra.mxu0 %v1101_v53  ;;  %v1143_v53 = vld [vmem:[#allocation6 + $0x10] sm:$0xff]  }
  0x59   :  { %654 = vmatprep.subr.bf16.mxu0 %v1102_v54  ;;  %v1144_v54 = vld [vmem:[#allocation6 + $0x48] sm:$0xff]  }
  0x5a   :  { %688 = vmatpush2.bf16.msra.mxu1 %v1092_v51  ;;  %v1141_v51 = vld [vmem:[#allocation6 + $0x18] sm:$0xff]  }
  0x5b   :  { %689 = vmatprep.subr.bf16.mxu1 %v1100_v52  ;;  %v1142_v52 = vld [vmem:[#allocation6 + $0x50] sm:$0xff]  }
  0x5c   :  { %655 = vmatpush2.bf16.msra.mxu0 %v1107_v57  ;;  %v1147_v57 = vld [vmem:[#allocation6] sm:$0xff]  }
  0x5d   :  { %656 = vmatprep.subr.bf16.mxu0 %v1108_v58  ;;  %v298_v58 = vld [vmem:[%s1308_s4] sm:$0x3] }
  0x5e   :  { %690 = vmatpush2.bf16.msra.mxu1 %v1098_v55  ;;  %v1145_v55 = vld [vmem:[#allocation6 + $0x8] sm:$0xff]  }
  0x5f   :  { %691 = vmatprep.subr.bf16.mxu1 %v1106_v56  ;;  %v1146_v56 = vld [vmem:[#allocation6 + $0x40] sm:$0xff]  }
  0x60   :  { %657 = vmatpush2.bf16.msra.mxu0 %v1113_v61  ;;  %v303_v61 = vrot.slane %v298_v58, %v82_v14 }
  0x61   :  { %658 = vmatprep.subr.bf16.mxu0 %v1114_v63  ;;  %v307_v63 = vrot.slane %v298_v58, %v86_v16 }
  0x62   :  { %692 = vmatpush2.bf16.msra.mxu1 %v1104_v59 }
  0x63   :  { %693 = vmatprep.subr.bf16.mxu1 %v1112_v60 }
  0x64   :  { %659 = vmatpush2.bf16.msra.mxu0 %v1119_v2 }
  0x65   :  { %660 = vmatprep.subr.bf16.mxu0 %v1120_v3 }
  0x66   :  { %694 = vmatpush2.bf16.msra.mxu1 %v1110_v62 }
  0x67   :  { %695 = vmatprep.subr.bf16.mxu1 %v1118_v0 }
  0x68   :  { %661 = vmatpush2.bf16.msra.mxu0 %v1125_v6 }
  0x69   :  { %992 = vmatprep.subr.bf16.mxu0 %v1132_v11 }
  0x6a   :  { %696 = vmatpush2.bf16.msra.mxu1 %v1116_v1 }
  0x6b   :  { %697 = vmatprep.subr.bf16.mxu1 %v1124_v4 }
  0x6e   :  { %698 = vmatpush2.bf16.msra.mxu1 %v1122_v5 }
  0x6f   :  { %699 = vmatprep.subr.bf16.mxu1 %v1128_v7 }
  0x72   :  { %700 = vmatpush2.bf16.msra.mxu1 %v1126_v8 }
  0x73   :  { %701 = vmatprep.subr.bf16.mxu1 %v1131_v9 }
  0x76   :  { %702 = vmatpush2.bf16.msra.mxu1 %v1129_v10 }
  0xf1   :  { %v178_v19 = vpop.f32.mrf.mxu1 }
  0xf2   :  { %v179_v20 = vadd.f32 %v178_v19, %v83_v17 }
  0xf3   :  { %v180_v22 = vpop.f32.mrf.mxu1 }
  0xf4   :  { %v181_v23 = vadd.f32 %v180_v22, %v87_v18  ;;  %v226_v25 = vmax.f32 %v179_v20, 0.0 }
  0xf5   :  { %v182_v26 = vpop.f32.mrf.mxu1 }
  0xf6   :  { %v227_v28 = vmax.f32 %v181_v23, 0.0  ;;  %v230_v33 = vpack.c.bf16 %v226_v25, %v226_v25 }
  0xf7   :  { %v183_v29 = vpop.f32.mrf.mxu1 }
  0xf8   :  { %v231_v30 = vpack.c.bf16 %v227_v28, %v227_v28 }
  0xf9   :  { %v219_v34 = vpop.f32.mrf.mxu1 }
  0xfa   :  { %v220_v36 = vadd.f32 %v219_v34, %v91_v27  ;;  %662 = vmatprep.mubr.bf16.mxu0 %v231_v30 }
  0xfb   :  { %v221_v37 = vpop.f32.mrf.mxu1  ;;  %663 = vmatmul.mubr.bf16.vlgmr.msra.gmra.mxu0 %v230_v33 }
  0xfc   :  { %v222_v38 = vadd.f32 %v221_v37, %v95_v31  ;;  %993 = vmatpush3.bf16.msra.mxu0 %v1133_v32  ;;  %v228_v40 = vmax.f32 %v220_v36, 0.0 }
  0xfd   :  { %v223_v41 = vpop.f32.mrf.mxu1  ;;  %994 = vmatprep.subr.bf16.mxu0 %v1134_v35 }
  0xfe   :  { %v229_v43 = vmax.f32 %v222_v38, 0.0  ;;  %v232_v47 = vpack.c.bf16 %v228_v40, %v228_v40 }
  0xff   :  { %v224_v44 = vpop.f32.mrf.mxu1 }
 0x100   :  { %v233_v45 = vpack.c.bf16 %v229_v43, %v229_v43  ;;  %995 = vmatpush3.bf16.msra.mxu0 %v1135_v39 }
 0x101   :  { %996 = vmatprep.subr.bf16.mxu0 %v1136_v42 }
 0x102   :  { %703 = vmatprep.mubr.bf16.mxu1 %v233_v45 }
 0x103   :  { %704 = vmatmul.mubr.bf16.vlgmr.msra.gmra.mxu1 %v232_v47 }
 0x104   :  { %997 = vmatpush3.bf16.msra.mxu0 %v1137_v46 }
 0x105   :  { %998 = vmatprep.subr.bf16.mxu0 %v1138_v48 }
 0x108   :  { %999 = vmatpush3.bf16.msra.mxu0 %v1139_v49 }
 0x109   :  { %1000 = vmatprep.subr.bf16.mxu0 %v1140_v50 }
 0x10c   :  { %1001 = vmatpush3.bf16.msra.mxu0 %v1141_v51 }
 0x10d   :  { %1002 = vmatprep.subr.bf16.mxu0 %v1142_v52 }
 0x110   :  { %1003 = vmatpush3.bf16.msra.mxu0 %v1143_v53 }
 0x111   :  { %1004 = vmatprep.subr.bf16.mxu0 %v1144_v54 }
 0x114   :  { %1005 = vmatpush3.bf16.msra.mxu0 %v1145_v55 }
 0x115   :  { %1006 = vmatprep.subr.bf16.mxu0 %v1146_v56 }
 0x118   :  { %1007 = vmatpush3.bf16.msra.mxu0 %v1147_v57 }
 0x1bb   :  { %v664_v59 = vpop.f32.mrf.mxu0 }
 0x1bc   :  { %v665_v1 = vadd.f32 %v664_v59, %v303_v61 }
 0x1bd   :  { %v666_v60 = vpop.f32.mrf.mxu0 }
 0x1be   :  { %v667_v3 = vadd.f32 %v666_v60, %v307_v63 }
 0x1bf   :  { %v668_v62 = vpop.f32.mrf.mxu0 }
 0x1c1   :  { %v669_v0 = vpop.f32.mrf.mxu0 }
 0x1c3   :  { %v705_v2 = vpop.f32.mrf.mxu1 }
 0x1c4   :  { %v706_v4 = vadd.f32 %v705_v2, %v665_v1 }
 0x1c5   :  { %v707_v5 = vpop.f32.mrf.mxu1 }
 0x1c6   :  { %v708_v6 = vadd.f32 %v707_v5, %v667_v3  ;;  %v712_v7 = vmax.f32 %v706_v4, 0.0 }
 0x1c7   :  { %v709_v8 = vpop.f32.mrf.mxu1 }
 0x1c8   :  { %v713_v9 = vmax.f32 %v708_v6, 0.0  ;;  %v714_v12 = vpack.c.bf16 %v712_v7, %v712_v7 }
 0x1c9   :  { %v710_v10 = vpop.f32.mrf.mxu1 }
 0x1ca   :  { %v715_v11 = vpack.c.bf16 %v713_v9, %v713_v9 }
 0x1cc   :  { %876 = vmatprep.mubr.bf16.mxu0 %v715_v11 }
 0x1cd   :  { %877 = vmatmul.mubr.bf16.vlgmr.msra.gmra.mxu0 %v714_v12 }
 0x28d   :  { %v1008_v14 = vpop.f32.mrf.mxu0 }
 0x28f   :  { %v1009_v15 = vpop.f32.mrf.mxu0 }
 0x290   :  { %v1010_v16 = vadd.f32 %v1009_v15, %v1008_v14 }
 0x291   :  { %v1011_v17 = vpop.f32.mrf.mxu0 }
 0x292   :  { %v891_v18 = vadd.f32 %v1010_v16, %v991_v13 }
 0x293   :  { %v1012_v19 = vpop.f32.mrf.mxu0 }
 0x294   :  { %1148 = vtanh.f32 %v891_v18 }
 0x2a1   :  { %v1149_v20 = vpop.eup %1148 }
 0x2a2   :  { %894 = vst.msk [vmem:[%s1311_s7] sm:$0xff] %vm893_vm1, %v1149_v20 }
 0x2a3   :  { %899 = vsyncpa [#allocation3], 1 }
 0x2a4   :  { %900 = vsyncpa [#allocation5], 1 }

</bundles_post_ra>
